<compile_context>
chip_gen: v7x
topology: tpu7x:2x2x1
jax: 0.10.0
libtpu: 0.0.40
codegen_flags: <defaults>
</compile_context>

<pallas_src>
import math

import jax
import jax.numpy as jnp
from jax import lax
from jax.experimental import pallas as pl
from jax.experimental.pallas import tpu as pltpu


def _round_up(n: int, m: int) -> int:
    return ((n + m - 1) // m) * m


def _vmem_tile_bytes(rows: int, cols: int, itemsize: int = 4) -> int:
    """f32 VMEM tile footprint with (8, 128) layout padding."""
    return _round_up(max(int(rows), 1), 8) * _round_up(max(int(cols), 1), 128) * itemsize


def _make_mlp_kernel(num_layers: int, dim_y: int):
    """Kernel for one batch tile. x block is (tb, dim_x); activations are (features, tb)."""

    def kernel(x_ref, *refs):
        o_ref = refs[-1]
        p = refs[:-1]

        # Layer 0: contract over the feature axis of the raw (tb, dim_x) x block.
        # Result is (out0, tb): batch lands on the lane axis with no transpose pass.
        h = lax.dot_general(
            p[0][...], x_ref[...],
            dimension_numbers=(((1,), (1,)), ((), ())),
            preferred_element_type=jnp.float32,
        ) + p[1][...]
        if num_layers >= 1:
            h = jnp.tanh(h)

        # Remaining layers: plain (out, in) @ (in, tb) on the MXU, f32 accumulation.
        for l in range(1, num_layers + 1):
            w = p[2 * l][...]
            b = p[2 * l + 1][...]
            h = jnp.dot(w, h, preferred_element_type=jnp.float32) + b
            if l < num_layers:
                h = jnp.tanh(h)

        logits = h                                            # (dim_y, tb)
        if dim_y == 1:
            out = 1.0 / (1.0 + jnp.exp(-logits))              # exact sigmoid
        elif dim_y > 2:
            m = jnp.max(logits, axis=0, keepdims=True)        # softmax over class axis
            e = jnp.exp(logits - m)
            out = e / jnp.sum(e, axis=0, keepdims=True)
        else:
            out = logits                                      # dim_y == 2: identity
        o_ref[...] = out.astype(o_ref.dtype)

    return kernel


def dynamic_imputation_nn_forward(x, params, dim_y, *, batch_tile=None):
    """Forward pass.

    x:      (batch, dim_x) float32.
    params: list of (W, b) pairs in native PyTorch layout, i.e. W is
            (out_features, in_features) and b is (out_features,).
            The last pair is the output layer.
    Returns (batch, dim_y) float32.
    """
    batch, dim_x = x.shape
    num_layers = len(params) - 1
    x = x.astype(jnp.float32)

    padded128 = _round_up(batch, 128)
    max_width = max(int(w.shape[0]) for (w, _) in params)

    def vmem_estimate(tb):
        est = 2 * _vmem_tile_bytes(tb, dim_x)                 # x blocks (double-buffered)
        est += 2 * _vmem_tile_bytes(dim_y, tb)                # out blocks (double-buffered)
        for (w, _) in params:                                 # resident weights/biases (x2)
            est += 2 * (_vmem_tile_bytes(w.shape[0], w.shape[1])
                        + _vmem_tile_bytes(w.shape[0], 1))
        est += 2 * _vmem_tile_bytes(max_width, tb)            # h / logits intermediates
        return est

    # --- batch tile selection ------------------------------------------------
    if batch_tile is None:
        tb = min(16384, padded128)
        # Keep >= 2 grid steps when the batch allows it so ("parallel",) can shard
        # the batch grid across v7x's two TensorCores.
        if padded128 >= 2 * 128:
            tb = min(tb, _round_up((padded128 + 1) // 2, 128))
        # Shrink until the VMEM estimate fits comfortably under the scoped limit.
        while tb > 128 and vmem_estimate(tb) > (24 << 20):
            tb = _round_up(tb // 2, 128)
    else:
        tb = _round_up(batch_tile, 128)

    padded_batch = _round_up(batch, tb)
    grid = (padded_batch // tb,)

    if padded_batch != batch:
        x = jnp.pad(x, ((0, padded_batch - batch), (0, 0)))

    # --- inputs / specs ------------------------------------------------------
    flat_inputs = [x]
    in_specs = [pl.BlockSpec((tb, dim_x), lambda i: (i, 0))]
    for (w, b) in params:
        w32 = w.astype(jnp.float32)                           # (out, in), VMEM-resident
        b2d = b.reshape(-1, 1).astype(jnp.float32)            # (out, 1)
        flat_inputs += [w32, b2d]
        # Constant block index => weights/biases stay resident in VMEM across the grid.
        in_specs += [
            pl.BlockSpec(w32.shape, lambda i: (0, 0)),
            pl.BlockSpec(b2d.shape, lambda i: (0, 0)),
        ]

    # --- cost estimate (advisory) --------------------------------------------
    flops = 2 * padded_batch * sum(int(w.shape[0]) * int(w.shape[1]) for (w, _) in params)
    transc = padded_batch * (sum(int(w.shape[0]) for (w, _) in params[:-1])
                             + (dim_y if dim_y != 2 else 0))
    bytes_accessed = 4 * (padded_batch * dim_x + padded_batch * dim_y
                          + sum(int(w.size) + int(b.size) for (w, b) in params))
    cost = pl.CostEstimate(flops=flops, transcendentals=transc,
                           bytes_accessed=bytes_accessed)

    vmem_limit = int(min(64 << 20, max(32 << 20, vmem_estimate(tb) + (4 << 20))))

    kernel = _make_mlp_kernel(num_layers, dim_y)
    out_t = pl.pallas_call(
        kernel,
        out_shape=jax.ShapeDtypeStruct((dim_y, padded_batch), jnp.float32),
        grid=grid,
        in_specs=in_specs,
        out_specs=pl.BlockSpec((dim_y, tb), lambda i: (0, i)),
        compiler_params=pltpu.CompilerParams(
            dimension_semantics=("parallel",),                # shard batch across TCs (v7x)
            vmem_limit_bytes=vmem_limit,
        ),
        cost_estimate=cost,
    )(*flat_inputs)

    # Output is (dim_y, padded_batch): lane-dense store inside the kernel; the tiny
    # transpose back to PyTorch's (batch, dim_y) layout is negligible.
    return jnp.transpose(out_t[:, :batch])


def _reference_forward(x, params, dim_y):
    """Pure-JAX f32 reference mirroring the PyTorch module exactly."""
    h = x
    for (w, b) in params[:-1]:
        h = jnp.tanh(h @ w.T + b)
    w, b = params[-1]
    logits = h @ w.T + b
    if dim_y == 1:
        return jax.nn.sigmoid(logits)
    if dim_y > 2:
        return jax.nn.softmax(logits, axis=1)
    return logits


if __name__ == "__main__":
    # Small shapes consistent with DynamicImputationNN defaults.
    dim_x = 16
    num_hidden = 32
    num_layers = 1

    key = jax.random.PRNGKey(0)

    def make_params(key, layer_dims):
        # PyTorch nn.Linear init: U(-1/sqrt(fan_in), 1/sqrt(fan_in)), weights (out, in).
        params = []
        for (fin, fout) in layer_dims:
            key, kw, kb = jax.random.split(key, 3)
            bound = 1.0 / math.sqrt(fin)
            w = jax.random.uniform(kw, (fout, fin), jnp.float32, -bound, bound)
            b = jax.random.uniform(kb, (fout,), jnp.float32, -bound, bound)
            params.append((w, b))
        return key, params

    # Exercise all three heads (sigmoid / identity / softmax) and a multi-tile grid.
    cases = [
        (8, 1),     # dim_y == 1  -> Sigmoid head, single-tile grid
        (8, 2),     # dim_y == 2  -> identity head
        (8, 4),     # dim_y  > 2  -> Softmax head
        (300, 4),   # multi-step grid with batch padding
    ]
    for batch, dim_y in cases:
        key, kx = jax.random.split(key)
        x = jax.random.normal(kx, (batch, dim_x), dtype=jnp.float32)
        layer_dims = [(dim_x, num_hidden)] * num_layers + [(num_hidden, dim_y)]
        key, params = make_params(key, layer_dims)

        out = jax.block_until_ready(dynamic_imputation_nn_forward(x, params, dim_y))
        ref = _reference_forward(x, params, dim_y)

        assert out.shape == (batch, dim_y), f"bad shape {out.shape} (dim_y={dim_y})"
        assert jnp.allclose(out, ref, atol=1e-5, rtol=1e-4), \
            f"mismatch (batch={batch}, dim_y={dim_y})"

    # TODO(synk): IterativeImputer fitting and the Adam training loop are host-side
    # procedures outside the forward pass and are not translated to Pallas.
    print("KERNEL_OK")
</pallas_src>

<mosaic_0001>
module attributes {stable_mosaic.version = 11 : i64} {
  func.func @kernel(%arg0: i32, %arg1: memref<128x16xf32, #tpu.memory_space<vmem>>, %arg2: memref<32x16xf32, #tpu.memory_space<vmem>>, %arg3: memref<32x1xf32, #tpu.memory_space<vmem>>, %arg4: memref<1x32xf32, #tpu.memory_space<vmem>>, %arg5: memref<1x1xf32, #tpu.memory_space<vmem>>, %arg6: memref<1x128xf32, #tpu.memory_space<vmem>>) attributes {dimension_semantics = [#tpu.dimension_semantics<parallel>], iteration_bounds = array<i64: 1>, scalar_prefetch = 0 : i64, scratch_operands = 0 : i64, tpu.core_type = #tpu.core_type<tc>, window_params = [{transform_indices = @transform_0, window_bounds = array<i64: 128, 16>}, {pipeline_mode = #tpu.pipeline_mode<synchronous>, transform_indices = @transform_1, window_bounds = array<i64: 32, 16>}, {pipeline_mode = #tpu.pipeline_mode<synchronous>, transform_indices = @transform_2, window_bounds = array<i64: 32, 1>}, {pipeline_mode = #tpu.pipeline_mode<synchronous>, transform_indices = @transform_3, window_bounds = array<i64: 1, 32>}, {pipeline_mode = #tpu.pipeline_mode<synchronous>, transform_indices = @transform_4, window_bounds = array<i64: 1, 1>}, {transform_indices = @transform_5, window_bounds = array<i64: 1, 128>}]} {
    %c0 = arith.constant 0 : index
    %c0_0 = arith.constant 0 : index
    %0 = vector.load %arg2[%c0, %c0_0] : memref<32x16xf32, #tpu.memory_space<vmem>>, vector<32x16xf32>
    %c0_1 = arith.constant 0 : index
    %c0_2 = arith.constant 0 : index
    %1 = vector.load %arg1[%c0_1, %c0_2] : memref<128x16xf32, #tpu.memory_space<vmem>>, vector<128x16xf32>
    %cst = arith.constant dense<0.000000e+00> : vector<32x128xf32>
    %2 = tpu.matmul %0, %1, %cst {dimension_numbers = #tpu.dot_dimension_numbers<[1], [1], [0], [0], [0, 0, 1, 0], [], []>} : vector<32x16xf32>, vector<128x16xf32>, vector<32x128xf32> -> vector<32x128xf32>
    %c0_3 = arith.constant 0 : index
    %c0_4 = arith.constant 0 : index
    %3 = vector.load %arg3[%c0_3, %c0_4] : memref<32x1xf32, #tpu.memory_space<vmem>>, vector<32x1xf32>
    %4 = vector.broadcast %3 : vector<32x1xf32> to vector<32x128xf32>
    %5 = arith.addf %2, %4 : vector<32x128xf32>
    %6 = math.tanh %5 : vector<32x128xf32>
    %c0_5 = arith.constant 0 : index
    %c0_6 = arith.constant 0 : index
    %7 = vector.load %arg4[%c0_5, %c0_6] : memref<1x32xf32, #tpu.memory_space<vmem>>, vector<1x32xf32>
    %c0_7 = arith.constant 0 : index
    %c0_8 = arith.constant 0 : index
    %8 = vector.load %arg5[%c0_7, %c0_8] : memref<1x1xf32, #tpu.memory_space<vmem>>, vector<1x1xf32>
    %cst_9 = arith.constant dense<0.000000e+00> : vector<1x128xf32>
    %9 = tpu.matmul %7, %6, %cst_9 {dimension_numbers = #tpu.dot_dimension_numbers<[1], [0], [0], [1], [0, 0, 1, 1], [], []>} : vector<1x32xf32>, vector<32x128xf32>, vector<1x128xf32> -> vector<1x128xf32>
    %10 = vector.broadcast %8 : vector<1x1xf32> to vector<1x128xf32>
    %11 = arith.addf %9, %10 : vector<1x128xf32>
    %cst_10 = arith.constant 0.000000e+00 : f32
    %12 = vector.broadcast %cst_10 : f32 to vector<1x128xf32>
    %13 = arith.subf %12, %11 : vector<1x128xf32>
    %14 = math.exp %13 : vector<1x128xf32>
    %cst_11 = arith.constant 1.000000e+00 : f32
    %15 = vector.broadcast %cst_11 : f32 to vector<1x128xf32>
    %16 = arith.addf %15, %14 : vector<1x128xf32>
    %cst_12 = arith.constant 1.000000e+00 : f32
    %17 = vector.broadcast %cst_12 : f32 to vector<1x128xf32>
    %18 = arith.divf %17, %16 : vector<1x128xf32>
    %c0_13 = arith.constant 0 : index
    %c0_14 = arith.constant 0 : index
    %19 = vector.load %arg6[%c0_13, %c0_14] : memref<1x128xf32, #tpu.memory_space<vmem>>, vector<1x128xf32>
    tpu.vector_store %arg6[%c0_13, %c0_14], %18 {strides = array<i32>} : memref<1x128xf32, #tpu.memory_space<vmem>>, vector<1x128xf32>,
    return
  }
  func.func @transform_0(%arg0: i32) -> (i32, i32) {
    %c0_i32 = arith.constant 0 : i32
    %c0_i32_0 = arith.constant 0 : i32
    return %arg0, %c0_i32 : i32, i32
  }
  func.func @transform_1(%arg0: i32) -> (i32, i32) {
    %c0_i32 = arith.constant 0 : i32
    %c0_i32_0 = arith.constant 0 : i32
    %c0_i32_1 = arith.constant 0 : i32
    return %c0_i32, %c0_i32_0 : i32, i32
  }
  func.func @transform_2(%arg0: i32) -> (i32, i32) {
    %c0_i32 = arith.constant 0 : i32
    %c0_i32_0 = arith.constant 0 : i32
    %c0_i32_1 = arith.constant 0 : i32
    return %c0_i32, %c0_i32_0 : i32, i32
  }
  func.func @transform_3(%arg0: i32) -> (i32, i32) {
    %c0_i32 = arith.constant 0 : i32
    %c0_i32_0 = arith.constant 0 : i32
    %c0_i32_1 = arith.constant 0 : i32
    return %c0_i32, %c0_i32_0 : i32, i32
  }
  func.func @transform_4(%arg0: i32) -> (i32, i32) {
    %c0_i32 = arith.constant 0 : i32
    %c0_i32_0 = arith.constant 0 : i32
    %c0_i32_1 = arith.constant 0 : i32
    return %c0_i32, %c0_i32_0 : i32, i32
  }
  func.func @transform_5(%arg0: i32) -> (i32, i32) {
    %c0_i32 = arith.constant 0 : i32
    %c0_i32_0 = arith.constant 0 : i32
    return %c0_i32, %arg0 : i32, i32
  }
}

</mosaic_0001>

<bundles_post_ra>
// kernel: tpu_custom_call.1
= control target key start
LH: loop header
LB: loop body
LE: loop exit
PB: predicated region body
PF: predicated region fallthrough
CT: control target
= control target key end

     0   :  { %s682_s0 = inlined_call_operand.vmem [shape: f32[128,16], index: 0, kind: input, shape index: {}]   ;;  %s683_s1 = inlined_call_operand.vmem [shape: f32[32,16], index: 1, kind: input, shape index: {}]   ;;  %s684_s2 = inlined_call_operand.vmem [shape: f32[32,1], index: 2, kind: input, shape index: {}]   ;;  %s685_s3 = inlined_call_operand.vmem [shape: f32[1,32], index: 3, kind: input, shape index: {}]   ;;  %s686_s4 = inlined_call_operand.<no memory space> [shape: f32[1,1], index: 4, kind: input, shape index: {}]   ;;  %s687_s5 = inlined_call_operand.hbm [shape: f32[1,128], index: 5, kind: output, shape index: {}]  }
   0x1   :  { %v10_v0 = vstv %s686_s4 }
   0x2   :  { %11 = vst [vmem:[#allocation2] sm:$0x1] %v10_v0 }
   0x3   :  { %v27_v1 = vld [vmem:[%s682_s0] sm:$0xff]  ;;  %v28_v2 = vld [vmem:[%s682_s0 + $0x8] sm:$0xff]  ;;  %vm67_vm0 = vcmask 130048   ;;  %v29_v3 = vld [vmem:[%s682_s0 + $0x10] sm:$0xff]  ;;  %v515_v7 = vmov 0  }
   0x4   :  { %v418_v4 = vpack.c.bf16 %v28_v2, %v27_v1  ;;  %vm564_vm1 = vmpackc.low %vm67_vm0, %vm67_vm0  ;;  %v30_v6 = vld [vmem:[%s682_s0 + $0x18] sm:$0xff]  ;;  %477 = vset.pattern.permute.xlu0 %v515_v7  ;;  %478 = vset.pattern.permute.xlu1 %v515_v7  ;;  %v23_v9 = vld [vmem:[%s683_s1] sm:$0xff] }
   0x5   :  { %v424_v8 = vpack.c.bf16 %v30_v6, %v29_v3  ;;  %v31_v10 = vld [vmem:[%s682_s0 + $0x20] sm:$0xff]  ;;  %v32_v11 = vld [vmem:[%s682_s0 + $0x28] sm:$0xff]  ;;  %401 = vmatprep.mubr.msk.f32.mxu0 %vm67_vm0, %v23_v9  ;;  %v45_v13 = vld [vmem:[%s684_s2 + $0x10] sm:$0xff] }
   0x6   :  { %420 = vmatprep.subr.msk.bf16.mxu0 %vm564_vm1, %v418_v4  ;;  %v43_v12 = vld [vmem:[%s684_s2] sm:$0xff]  ;;  %59 = vperm.xlu1 %478, %v45_v13  }
   0x7   :  { %423 = vmatpush3.bf16.xpose.msk.msra.mxu0 %vm564_vm1, %v418_v4  ;;  %49 = vperm.xlu0 %477, %v43_v12  }
   0x8   :  { %426 = vmatprep.subr.msk.bf16.mxu0 %vm564_vm1, %v424_v8 }
   0x9   :  { %12 = vsyncpa [#allocation4], 0  ;;  %v430_v14 = vpack.c.bf16 %v32_v11, %v31_v10  ;;  %v44_v15 = vld [vmem:[%s684_s2 + $0x8] sm:$0xff]  ;;  %v46_v16 = vld [vmem:[%s684_s2 + $0x18] sm:$0xff]  ;;  %v516_v36 = vmov 0.0|0.0   ;;  %vm517_vm2 = vmmov 0   ;;  %v224_v57 = vlaneseq }
   0xa   :  { %v218_v17 = vld [vmem:[#allocation2] sm:$0x1]  ;;  %64 = vperm.xlu1 %478, %v46_v16   ;;  %v33_v18 = vld [vmem:[%s682_s0 + $0x30] sm:$0xff]  ;;  %v34_v19 = vld [vmem:[%s682_s0 + $0x38] sm:$0xff]  ;;  %466 = vmatprep.subr.bf16.mxu1 %v516_v36  ;;  %v518_v37 = vmov 0.0   ;;  %vm228_vm3 = vcmask 261120  }
   0xb   :  { %54 = vperm.xlu0 %477, %v44_v15   ;;  %v436_v20 = vpack.c.bf16 %v34_v19, %v33_v18  ;;  %v35_v21 = vld [vmem:[%s682_s0 + $0x40] sm:$0xff]  ;;  %v36_v22 = vld [vmem:[%s682_s0 + $0x48] sm:$0xff]  ;;  %v37_v24 = vld [vmem:[%s682_s0 + $0x50] sm:$0xff]  ;;  %415 = vmatprep.mubr.msk.f32.mxu1 %vm517_vm2, %v518_v37  ;;  %v225_v58 = vshrl.u32 %v224_v57, 7  ;;  %s519_s15 = smov [#allocation3]  }
   0xc   :  { %v442_v23 = vpack.c.bf16 %v36_v22, %v35_v21  ;;  %v38_v25 = vld [vmem:[%s682_s0 + $0x58] sm:$0xff]  ;;  %v39_v27 = vld [vmem:[%s682_s0 + $0x60] sm:$0xff]  ;;  %v40_v28 = vld [vmem:[%s682_s0 + $0x68] sm:$0xff]  ;;  %s315_s16 = sshll.u32 %s519_s15, 4  ;;  %s316_s16 = int_to_ptr.vmem [resolvable:$true] %s315_s16 }
   0xd   :  { %v448_v26 = vpack.c.bf16 %v38_v25, %v37_v24  ;;  %v454_v29 = vpack.c.bf16 %v40_v28, %v39_v27  ;;  %v41_v30 = vld [vmem:[%s682_s0 + $0x70] sm:$0xff]  ;;  %v42_v31 = vld [vmem:[%s682_s0 + $0x78] sm:$0xff]  ;;  %v24_v33 = vld [vmem:[%s683_s1 + $0x8] sm:$0xff]  ;;  %v226_v59 = vsub.s32 0, %v225_v58  ;;  %s495_s17 = scalar_lea.vmem %s316_s16, 32  ;;  %p496_p1 = scmp.lt.s32.totalorder %s316_s16, %s316_s16 }
   0xe   :  { %v460_v32 = vpack.c.bf16 %v42_v31, %v41_v30  ;;  %v25_v34 = vld [vmem:[%s683_s1 + $0x10] sm:$0xff]  ;;  %v26_v35 = vld [vmem:[%s683_s1 + $0x18] sm:$0xff]  ;;  %v217_v56 = vld [vmem:[%s685_s3] sm:$0x1]  ;;  %s491_s3 = scalar_lea.vmem %s316_s16, 16 }
   0xf   :  { %429 = vmatpush3.bf16.xpose.msk.msra.mxu0 %vm564_vm1, %v424_v8  ;;  %221 = vperm.xlu0 %477, %v218_v17   ;;  %p492_p0 = scmp.ne.s32.totalorder %s316_s16, %s491_s3  ;;  %p497_p2 = scmp.lt.s32.totalorder %s495_s17, %s491_s3 }
  0x10   :  { %432 = vmatprep.subr.msk.bf16.mxu0 %vm564_vm1, %v430_v14 }
  0x11   :  { %p498_p3 = por %p497_p2, %p496_p1 }
  0x13   :  { %p499_p4 = pnand %p498_p3, %p492_p0 }
  0x17   :  { %435 = vmatpush3.bf16.xpose.msk.msra.mxu0 %vm564_vm1, %v430_v14 }
  0x18   :  { %438 = vmatprep.subr.msk.bf16.mxu0 %vm564_vm1, %v436_v20 }
  0x1f   :  { %441 = vmatpush3.bf16.xpose.msk.msra.mxu0 %vm564_vm1, %v436_v20 }
  0x20   :  { %444 = vmatprep.subr.msk.bf16.mxu0 %vm564_vm1, %v442_v23 }
  0x27   :  { %447 = vmatpush3.bf16.xpose.msk.msra.mxu0 %vm564_vm1, %v442_v23 }
  0x28   :  { %450 = vmatprep.subr.msk.bf16.mxu0 %vm564_vm1, %v448_v26 }
  0x2f   :  { %453 = vmatpush3.bf16.xpose.msk.msra.mxu0 %vm564_vm1, %v448_v26 }
  0x30   :  { %456 = vmatprep.subr.msk.bf16.mxu0 %vm564_vm1, %v454_v29 }
  0x37   :  { %459 = vmatpush3.bf16.xpose.msk.msra.mxu0 %vm564_vm1, %v454_v29 }
  0x38   :  { %462 = vmatprep.subr.msk.bf16.mxu0 %vm564_vm1, %v460_v32 }
  0x3f   :  { %465 = vmatpush3.bf16.xpose.msk.msra.mxu0 %vm564_vm1, %v460_v32 }
  0x46   :  { %402 = vmatmul.mubr.msk.f32.vlgmr.msra.gmra.mrb[0].mxu0 %vm67_vm0, %v24_v33 }
  0x47   :  { %404 = vmatprep.mubr.msk.f32.mxu0 %vm67_vm0, %v25_v34 }
  0x4a   :  { %405 = vmatmul.mubr.msk.f32.gmra.mrb[2].mxu0 %vm67_vm0, %v26_v35 }
  0x85   :  { %v60_v39 = vpop.permute.xlu1 %59 }
  0x86   :  { %v50_v38 = vpop.permute.xlu0 %49 }
  0x89   :  { %v65_v45 = vpop.permute.xlu1 %64 }
  0x8a   :  { %v55_v40 = vpop.permute.xlu0 %54 }
  0x8e   :  { %v222_v60 = vpop.permute.xlu0 %221 }
  0x8f   :  { %v227_v61 = vrot.slane %v222_v60, %v226_v59 }
 0x119   :  { %v403_v41 = vpop.f32.mrb[0].mxu0 }
 0x11a   :  { %v200_v42 = vadd.f32 %v403_v41, %v55_v40  ;;  %v194_v43 = vpop.f32.mrb[1].mxu0 }
 0x11b   :  { %v195_v44 = vadd.f32 %v194_v43, %v50_v38 }
 0x11c   :  { %479 = vtanh.f32 %v200_v42 }
 0x11d   :  { %481 = vtanh.f32 %v195_v44  ;;  %v406_v46 = vpop.f32.mrb[2].mxu0 }
 0x11e   :  { %v210_v47 = vadd.f32 %v406_v46, %v65_v45  ;;  %v204_v48 = vpop.f32.mrb[3].mxu0 }
 0x11f   :  { %v205_v49 = vadd.f32 %v204_v48, %v60_v39 }
 0x120   :  { %483 = vtanh.f32 %v210_v47 }
 0x121   :  { %485 = vtanh.f32 %v205_v49 }
 0x126   :  { %v480_v50 = vpop.eup %479 }
 0x127   :  { %v482_v51 = vpop.eup %481 }
 0x128   :  { %v467_v52 = vpack.c.bf16 %v480_v50, %v482_v51 }
 0x12a   :  { %v484_v53 = vpop.eup %483  ;;  %468 = vmatpush3.bf16.msra.mxu1 %v467_v52 }
 0x12b   :  { %v486_v54 = vpop.eup %485  ;;  %469 = vmatprep.subr.bf16.mxu1 %v516_v36 }
 0x12c   :  { %v470_v55 = vpack.c.bf16 %v484_v53, %v486_v54 }
 0x12e   :  { %471 = vmatpush3.bf16.msra.mxu1 %v470_v55 }
 0x131   :  { %416 = vmatmul.mubr.msk.f32.vlgmr.msra.gmra.mrb[0].mxu1 %vm228_vm3, %v217_v56 }
 0x204   :  { %v298_v62 = vpop.f32.mrb[0].mxu1 }
 0x205   :  { %v299_v63 = vadd.f32 %v298_v62, %v227_v61  ;;  %v417_v0 = vpop.f32.mrb[1].mxu1 }
 0x207   :  { %v302_v1 = vsub.f32 0.0, %v299_v63 }
 0x209   :  { %v303_v2 = vmul.f32 1.442695, %v302_v1 }
 0x20b   :  { %487 = vpow2.f32 %v303_v2 }
 0x215   :  { %v488_v3 = vpop.eup %487 }
 0x216   :  { %v305_v4 = vadd.f32 1.0, %v488_v3 }
 0x218   :  { %489 = vrcp.f32 %v305_v4 }
 0x222   :  { %v490_v5 = vpop.eup %489 }
 0x223   :  { %308 = vst [vmem:[#allocation3] sm:$0x1] %v490_v5 }
 0x224   :  { %502 = shalt.err (!%p499_p4)
}
 0x225   :  { %s503_s2 = scalar_lea.hbm %s687_s5, 16 }
 0x226   :  { %p504_p5 = scmp.ne.s32.totalorder %s687_s5, %s503_s2  ;;  %p507_p6 = scmp.lt.u32.totalorder %s503_s2, %s687_s5 }
 0x228   :  { %p509_p7 = pnand %p507_p6, %p504_p5 }
 0x22a   :  { %512 = shalt.err (!%p509_p7)
}
 0x22b   :  { %318 = dma.vmem_to_hbm [thread:$0]  %s316_s16, 16, %s687_s5, [#allocation4]  }
 0x22c   :  { %513 = dma.done.wait [#allocation4], 16  }
 0x22d   :  { %514 = vsyncadd [#allocation4], 4294967280 }
 0x22e   :  { %322 = vsyncpa [#allocation4], 1 }

</bundles_post_ra>
